<compile_context>
chip_gen: v7x
topology: tpu7x:2x2x1
jax: 0.10.0
libtpu: 0.0.40
codegen_flags: <defaults>
</compile_context>

<pallas_src>
import functools

import jax
import jax.numpy as jnp
from jax.experimental import pallas as pl
from jax.experimental.pallas import tpu as pltpu

_HIDDEN = 128


def _mlp_kernel(x_ref, w1_ref, b1_ref, w2_ref, b2_ref, q_ref, a_ref, *, n_actions):
    # Fused in VMEM: matmul (MXU) -> bias + ReLU (VPU) -> matmul (MXU) -> bias
    # -> greedy-action reduce (VPU/XLU).
    x = x_ref[...]                                                    # (B, D_in)
    h = jnp.dot(x, w1_ref[...], preferred_element_type=jnp.float32)   # (B, 128)
    h = jnp.maximum(h + b1_ref[...], 0.0)                             # bias broadcast (1, 128)
    q = jnp.dot(h, w2_ref[...], preferred_element_type=jnp.float32)   # (B, n_pad) lane-dense
    q = q + b2_ref[...]
    q_ref[...] = q.astype(q_ref.dtype)

    # Fused greedy action: argmax over the real action lanes (first index on ties),
    # implemented as max + first-matching-lane (avoids argmax lowering issues).
    lane = jax.lax.broadcasted_iota(jnp.int32, q.shape, 1)            # (B, n_pad)
    masked = jnp.where(lane < n_actions, q, -jnp.inf)                 # hide zero-padded lanes
    m = jnp.max(masked, axis=-1, keepdims=True)
    a_ref[...] = jnp.min(
        jnp.where(masked == m, lane, q.shape[-1]), axis=-1, keepdims=True
    ).astype(a_ref.dtype)


def _call_single(x, w1, b1, w2p, b2p, n_actions):
    # Single-shot fused op: no grid, all operands VMEM-resident.
    B = x.shape[0]
    n_pad = w2p.shape[1]
    kernel = functools.partial(_mlp_kernel, n_actions=n_actions)
    vmem = pl.BlockSpec(memory_space=pltpu.MemorySpace.VMEM)
    return pl.pallas_call(
        kernel,
        out_shape=(
            jax.ShapeDtypeStruct((B, n_pad), jnp.float32),
            jax.ShapeDtypeStruct((B, 1), jnp.int32),
        ),
        in_specs=[vmem, vmem, vmem, vmem, vmem],
        out_specs=(vmem, vmem),
    )(x, w1, b1, w2p, b2p)


def _call_gridded(x, w1, b1, w2p, b2p, n_actions, tb):
    # Large-batch path: 1-D grid over B, weights stay resident, batch sharded
    # across TensorCores via "parallel" semantics.
    B, d_in = x.shape
    hidden = w1.shape[1]
    n_pad = w2p.shape[1]
    bp = tb * pl.cdiv(B, tb)
    if bp != B:
        x = jnp.zeros((bp, d_in), x.dtype).at[:B].set(x)

    kernel = functools.partial(_mlp_kernel, n_actions=n_actions)
    q_pad, act = pl.pallas_call(
        kernel,
        out_shape=(
            jax.ShapeDtypeStruct((bp, n_pad), jnp.float32),
            jax.ShapeDtypeStruct((bp, 1), jnp.int32),
        ),
        grid=(bp // tb,),
        in_specs=[
            pl.BlockSpec((tb, d_in), lambda i: (i, 0)),
            pl.BlockSpec((d_in, hidden), lambda i: (0, 0)),
            pl.BlockSpec((1, hidden), lambda i: (0, 0)),
            pl.BlockSpec((hidden, n_pad), lambda i: (0, 0)),
            pl.BlockSpec((1, n_pad), lambda i: (0, 0)),
        ],
        out_specs=(
            pl.BlockSpec((tb, n_pad), lambda i: (i, 0)),
            pl.BlockSpec((tb, 1), lambda i: (i, 0)),
        ),
        compiler_params=pltpu.CompilerParams(dimension_semantics=("parallel",)),
    )(x, w1, b1, w2p, b2p)
    return q_pad[:B], act[:B]


@functools.partial(jax.jit, static_argnames=("n_actions", "batch_tile"))
def network_forward(x, w1, b1, w2p, b2p, *, n_actions, batch_tile=256):
    """Fused MLP forward.

    x: (B, D_in) f32; w2p/b2p are the lane-padded second-layer params from
    init_params.  Returns (q_values (B, n_actions) f32, greedy_action (B,) i32).
    """
    B = x.shape[0]
    if B <= batch_tile:
        q_pad, act = _call_single(x, w1, b1, w2p, b2p, n_actions)
    else:
        q_pad, act = _call_gridded(x, w1, b1, w2p, b2p, n_actions, batch_tile)
    # Slice fused by XLA inside this jit region (no separate dispatch).
    return q_pad[:, :n_actions], act[:, 0]


def init_params(key, input_dims, n_actions, hidden=_HIDDEN):
    # Deterministic init mimicking PyTorch nn.Linear defaults:
    # U(-1/sqrt(fan_in), 1/sqrt(fan_in)) for weights and biases.
    # The second layer is stored pre-padded to a lane-dense output width so the
    # hot-path forward never pads.
    k1, k2, k3, k4 = jax.random.split(key, 4)
    lim1 = 1.0 / jnp.sqrt(jnp.float32(input_dims))
    lim2 = 1.0 / jnp.sqrt(jnp.float32(hidden))
    w1 = jax.random.uniform(k1, (input_dims, hidden), jnp.float32, -lim1, lim1)
    b1 = jax.random.uniform(k2, (1, hidden), jnp.float32, -lim1, lim1)
    w2 = jax.random.uniform(k3, (hidden, n_actions), jnp.float32, -lim2, lim2)
    b2 = jax.random.uniform(k4, (1, n_actions), jnp.float32, -lim2, lim2)

    n_pad = 128 * pl.cdiv(n_actions, 128)
    w2p = jnp.zeros((hidden, n_pad), jnp.float32).at[:, :n_actions].set(w2)
    b2p = jnp.zeros((1, n_pad), jnp.float32).at[:, :n_actions].set(b2)
    return w1, b1, w2p, b2p


if __name__ == "__main__":
    # FrozenLake: 16 discrete states (one-hot style features), 4 actions.
    input_dims, n_actions = 16, 4
    batch = 8

    key = jax.random.PRNGKey(0)
    kx, kp, kx2 = jax.random.split(key, 3)
    w1, b1, w2p, b2p = init_params(kp, input_dims, n_actions)
    w2 = w2p[:, :n_actions]
    b2 = b2p[:, :n_actions]

    # --- small batch: single-shot (no grid) path ---
    x = jax.random.normal(kx, (batch, input_dims), jnp.float32)
    q, act = network_forward(x, w1, b1, w2p, b2p, n_actions=n_actions)
    q, act = jax.block_until_ready((q, act))

    ref = jnp.maximum(x @ w1 + b1, 0.0) @ w2 + b2
    assert q.shape == (batch, n_actions)
    assert act.shape == (batch,)
    assert jnp.allclose(q, ref, atol=1e-5, rtol=1e-5)
    assert jnp.array_equal(act, jnp.argmax(q, axis=-1))

    # --- large batch: gridded (megacore-parallel) path ---
    xb = jax.random.normal(kx2, (1024, input_dims), jnp.float32)
    qb, actb = network_forward(xb, w1, b1, w2p, b2p, n_actions=n_actions)
    qb, actb = jax.block_until_ready((qb, actb))

    refb = jnp.maximum(xb @ w1 + b1, 0.0) @ w2 + b2
    assert qb.shape == (1024, n_actions)
    assert jnp.allclose(qb, refb, atol=1e-5, rtol=1e-5)
    assert jnp.array_equal(actb, jnp.argmax(qb, axis=-1))

    print("KERNEL_OK")
</pallas_src>

<mosaic_0001>
module attributes {stable_mosaic.version = 11 : i64} {
  func.func @_mlp_kernel(%arg0: memref<8x16xf32, #tpu.memory_space<vmem>>, %arg1: memref<16x128xf32, #tpu.memory_space<vmem>>, %arg2: memref<1x128xf32, #tpu.memory_space<vmem>>, %arg3: memref<128x128xf32, #tpu.memory_space<vmem>>, %arg4: memref<1x128xf32, #tpu.memory_space<vmem>>, %arg5: memref<8x128xf32, #tpu.memory_space<vmem>>, %arg6: memref<8x1xi32, #tpu.memory_space<vmem>>) attributes {dimension_semantics = [], scalar_prefetch = 0 : i64, scratch_operands = 0 : i64, tpu.core_type = #tpu.core_type<tc>} {
    %c0 = arith.constant 0 : index
    %c0_0 = arith.constant 0 : index
    %0 = vector.load %arg0[%c0, %c0_0] : memref<8x16xf32, #tpu.memory_space<vmem>>, vector<8x16xf32>
    %c0_1 = arith.constant 0 : index
    %c0_2 = arith.constant 0 : index
    %1 = vector.load %arg1[%c0_1, %c0_2] : memref<16x128xf32, #tpu.memory_space<vmem>>, vector<16x128xf32>
    %cst = arith.constant dense<0.000000e+00> : vector<8x128xf32>
    %2 = tpu.matmul %0, %1, %cst {dimension_numbers = #tpu.dot_dimension_numbers<[1], [0], [0], [1], [0, 0, 1, 1], [], []>} : vector<8x16xf32>, vector<16x128xf32>, vector<8x128xf32> -> vector<8x128xf32>
    %c0_3 = arith.constant 0 : index
    %c0_4 = arith.constant 0 : index
    %3 = vector.load %arg2[%c0_3, %c0_4] : memref<1x128xf32, #tpu.memory_space<vmem>>, vector<1x128xf32>
    %4 = vector.broadcast %3 : vector<1x128xf32> to vector<8x128xf32>
    %5 = arith.addf %2, %4 : vector<8x128xf32>
    %cst_5 = arith.constant 0.000000e+00 : f32
    %6 = vector.broadcast %cst_5 : f32 to vector<8x128xf32>
    %7 = arith.maximumf %5, %6 : vector<8x128xf32>
    %c0_6 = arith.constant 0 : index
    %c0_7 = arith.constant 0 : index
    %8 = vector.load %arg3[%c0_6, %c0_7] : memref<128x128xf32, #tpu.memory_space<vmem>>, vector<128x128xf32>
    %cst_8 = arith.constant dense<0.000000e+00> : vector<8x128xf32>
    %9 = tpu.matmul %7, %8, %cst_8 {dimension_numbers = #tpu.dot_dimension_numbers<[1], [0], [0], [1], [0, 0, 1, 1], [], []>} : vector<8x128xf32>, vector<128x128xf32>, vector<8x128xf32> -> vector<8x128xf32>
    %c0_9 = arith.constant 0 : index
    %c0_10 = arith.constant 0 : index
    %10 = vector.load %arg4[%c0_9, %c0_10] : memref<1x128xf32, #tpu.memory_space<vmem>>, vector<1x128xf32>
    %11 = vector.broadcast %10 : vector<1x128xf32> to vector<8x128xf32>
    %12 = arith.addf %9, %11 : vector<8x128xf32>
    %c0_11 = arith.constant 0 : index
    %c0_12 = arith.constant 0 : index
    %13 = vector.load %arg5[%c0_11, %c0_12] : memref<8x128xf32, #tpu.memory_space<vmem>>, vector<8x128xf32>
    tpu.vector_store %arg5[%c0_11, %c0_12], %12 {strides = array<i32>} : memref<8x128xf32, #tpu.memory_space<vmem>>, vector<8x128xf32>,
    %14 = tpu.iota {dimensions = array<i32: 1>} : vector<8x128xi32>
    %c4_i32 = arith.constant 4 : i32
    %15 = vector.broadcast %c4_i32 : i32 to vector<8x128xi32>
    %16 = arith.cmpi slt, %14, %15 : vector<8x128xi32>
    %cst_13 = arith.constant 0xFF800000 : f32
    %17 = vector.broadcast %cst_13 : f32 to vector<8x128xf32>
    %18 = arith.select %16, %12, %17 : vector<8x128xi1>, vector<8x128xf32>
    %cst_14 = arith.constant dense<0xFF800000> : vector<8xf32>
    %19 = vector.multi_reduction <maximumf>, %18, %cst_14 [1] : vector<8x128xf32> to vector<8xf32>
    %20 = vector.shape_cast %19 : vector<8xf32> to vector<8x1xf32>
    %21 = vector.broadcast %20 : vector<8x1xf32> to vector<8x128xf32>
    %22 = arith.cmpf oeq, %18, %21 : vector<8x128xf32>
    %c128_i32 = arith.constant 128 : i32
    %23 = vector.broadcast %c128_i32 : i32 to vector<8x128xi32>
    %24 = arith.select %22, %14, %23 : vector<8x128xi1>, vector<8x128xi32>
    %cst_15 = arith.constant dense<2147483647> : vector<8xi32>
    %25 = vector.multi_reduction <minsi>, %24, %cst_15 [1] : vector<8x128xi32> to vector<8xi32>
    %26 = vector.shape_cast %25 : vector<8xi32> to vector<8x1xi32>
    %c0_16 = arith.constant 0 : index
    %c0_17 = arith.constant 0 : index
    %27 = vector.load %arg6[%c0_16, %c0_17] : memref<8x1xi32, #tpu.memory_space<vmem>>, vector<8x1xi32>
    tpu.vector_store %arg6[%c0_16, %c0_17], %26 {strides = array<i32>} : memref<8x1xi32, #tpu.memory_space<vmem>>, vector<8x1xi32>,
    return
  }
}

</mosaic_0001>

<bundles_post_ra>
// kernel: network_forward.1
= control target key start
LH: loop header
LB: loop body
LE: loop exit
PB: predicated region body
PF: predicated region fallthrough
CT: control target
= control target key end

     0   :  { %12 = vsyncpa [#allocation3], 0  ;;  %s541_s0 = inlined_call_operand.hbm [shape: f32[8,16], index: 0, kind: input, shape index: {}]   ;;  %s542_s1 = inlined_call_operand.hbm [shape: f32[16,128], index: 1, kind: input, shape index: {}]   ;;  %s543_s2 = inlined_call_operand.vmem [shape: f32[1,128], index: 2, kind: input, shape index: {}]   ;;  %s544_s3 = inlined_call_operand.hbm [shape: f32[128,128], index: 3, kind: input, shape index: {}]   ;;  %s545_s4 = inlined_call_operand.vmem [shape: f32[1,128], index: 4, kind: input, shape index: {}]   ;;  %s546_s5 = inlined_call_operand.vmem [shape: f32[8,128], index: 5, kind: output, shape index: {0}]   ;;  %s547_s6 = inlined_call_operand.vmem [shape: s32[8,1], index: 6, kind: output, shape index: {1}]  }
   0x1   :  { %13 = vsyncpa [#allocation5], 0  ;;  %s444_s21 = smov [#allocation4]   ;;  %s374_s25 = scalar_lea.hbm %s542_s1, 256 }
   0x2   :  { %s29_s22 = sshll.u32 %s444_s21, 4  ;;  %p375_p0 = scmp.ne.s32.totalorder %s542_s1, %s374_s25  ;;  %s30_s22 = int_to_ptr.vmem [resolvable:$true] %s29_s22 }
   0x3   :  { %p378_p1 = scmp.lt.u32.totalorder %s374_s25, %s542_s1 }
   0x5   :  { %p380_p2 = pnand %p378_p1, %p375_p0 }
   0x7   :  { %383 = shalt.err (!%p380_p2)
}
   0x8   :  { %s384_s30 = scalar_lea.vmem %s30_s22, 256  ;;  %p389_p4 = scmp.lt.s32.totalorder %s30_s22, %s30_s22 }
   0x9   :  { %p385_p3 = scmp.ne.s32.totalorder %s30_s22, %s384_s30  ;;  %p390_p5 = scmp.lt.s32.totalorder %s384_s30, %s384_s30 }
   0xb   :  { %p391_p6 = por %p390_p5, %p389_p4 }
   0xd   :  { %p392_p7 = pnand %p391_p6, %p385_p3 }
   0xf   :  { %395 = shalt.err (!%p392_p7)
}
  0x10   :  { %s445_s7 = smov 128   ;;  %s446_s8 = smov 8  }
  0x11   :  { %35 = dma.hbm_to_vmem [thread:$0]  %s542_s1, 256, %s30_s22, [#allocation5], %s445_s7, %s445_s7, %s446_s8  }
  0x12   :  { %s447_s11 = smov [#allocation2]   ;;  %s448_s13 = smov [#allocation6]  }
  0x13   :  { %s20_s12 = sshll.u32 %s447_s11, 4  ;;  %s43_s14 = sshll.u32 %s448_s13, 4  ;;  %s21_s12 = int_to_ptr.vmem [resolvable:$true] %s20_s12  ;;  %s44_s14 = int_to_ptr.vmem [resolvable:$true] %s43_s14 }
  0x14   :  { %s396_s17 = scalar_lea.hbm %s541_s0, 128 }
  0x15   :  { %p397_p8 = scmp.ne.s32.totalorder %s541_s0, %s396_s17  ;;  %p400_p9 = scmp.lt.u32.totalorder %s396_s17, %s541_s0 }
  0x17   :  { %p402_p10 = pnand %p400_p9, %p397_p8 }
  0x19   :  { %405 = shalt.err (!%p402_p10)
}
  0x1a   :  { %s406_s1 = scalar_lea.vmem %s21_s12, 128  ;;  %p411_p12 = scmp.lt.s32.totalorder %s21_s12, %s21_s12 }
  0x1b   :  { %p407_p11 = scmp.ne.s32.totalorder %s21_s12, %s406_s1  ;;  %p412_p13 = scmp.lt.s32.totalorder %s406_s1, %s406_s1 }
  0x1d   :  { %p413_p0 = por %p412_p13, %p411_p12 }
  0x1f   :  { %p414_p1 = pnand %p413_p0, %p407_p11 }
  0x21   :  { %417 = shalt.err (!%p414_p1)
}
  0x22   :  { %23 = dma.hbm_to_vmem [thread:$0]  %s541_s0, 128, %s21_s12, [#allocation3]  }
  0x23   :  { %s418_s26 = scalar_lea.hbm %s544_s3, 2048 }
  0x24   :  { %p419_p2 = scmp.ne.s32.totalorder %s544_s3, %s418_s26  ;;  %p422_p3 = scmp.lt.u32.totalorder %s418_s26, %s544_s3 }
  0x26   :  { %p424_p4 = pnand %p422_p3, %p419_p2 }
  0x28   :  { %427 = shalt.err (!%p424_p4)
}
  0x29   :  { %s428_s9 = scalar_lea.vmem %s44_s14, 2048  ;;  %p433_p6 = scmp.lt.s32.totalorder %s44_s14, %s44_s14 }
  0x2a   :  { %p429_p5 = scmp.ne.s32.totalorder %s44_s14, %s428_s9  ;;  %p434_p7 = scmp.lt.s32.totalorder %s428_s9, %s428_s9 }
  0x2c   :  { %p435_p8 = por %p434_p7, %p433_p6 }
  0x2e   :  { %p436_p9 = pnand %p435_p8, %p429_p5 }
  0x30   :  { %439 = shalt.err (!%p436_p9)
}
  0x31   :  { %49 = dma.hbm_to_vmem [thread:$0]  %s544_s3, 2048, %s44_s14, [#allocation5], %s445_s7, %s445_s7, %s446_s8  }
  0x32   :  { %440 = dma.done.wait [#allocation3], 128  }
  0x33   :  { %441 = vsyncadd [#allocation3], 4294967168 }
  0x34   :  { %442 = dma.done.wait [#allocation5], 2304  }
  0x35   :  { %443 = vsyncadd [#allocation5], 4294964992  ;;  %v449_v0 = vmov 0.0|0.0   ;;  %vm450_vm0 = vmmov 0   ;;  %v451_v1 = vmov 0.0   ;;  %v62_v2 = vld [vmem:[#allocation4] sm:$0xff]  ;;  %v240_v35 = vlaneseq }
  0x36   :  { %339 = vmatprep.subr.bf16.mxu0 %v449_v0  ;;  %301 = vmatprep.mubr.msk.f32.mxu0 %vm450_vm0, %v451_v1  ;;  %v63_v3 = vld [vmem:[#allocation4 + $0x8] sm:$0xff]  ;;  %v146_v5 = vld [vmem:[#allocation6] sm:$0xff]  ;;  %v147_v6 = vld [vmem:[#allocation6 + $0x8] sm:$0xff]  ;;  %vm71_vm1 = vcmask 130048   ;;  %vm262_vm5 = vcmask 7168  }
  0x37   :  { %342 = vmatprep.subr.bf16.mxu1 %v449_v0  ;;  %336 = vmatprep.mubr.msk.f32.mxu1 %vm450_vm0, %v451_v1  ;;  %v340_v4 = vpack.c.bf16 %v63_v3, %v62_v2  ;;  %v148_v7 = vld [vmem:[#allocation6 + $0x10] sm:$0xff]  ;;  %v343_v8 = vpack.c.bf16 %v147_v6, %v146_v5  ;;  %v149_v9 = vld [vmem:[#allocation6 + $0x18] sm:$0xff]  ;;  %v61_v10 = vld [vmem:[#allocation2] sm:$0xff]  ;;  %v241_v36 = vand.u32 127, %v240_v35 }
  0x38   :  { %v346_v11 = vpack.c.bf16 %v149_v9, %v148_v7  ;;  %v150_v12 = vld [vmem:[#allocation6 + $0x20] sm:$0xff]  ;;  %v151_v13 = vld [vmem:[#allocation6 + $0x28] sm:$0xff]  ;;  %v152_v15 = vld [vmem:[#allocation6 + $0x30] sm:$0xff] }
  0x39   :  { %341 = vmatpush3.bf16.msra.mxu0 %v340_v4  ;;  %344 = vmatpush3.bf16.msra.mxu1 %v343_v8  ;;  %v349_v14 = vpack.c.bf16 %v151_v13, %v150_v12  ;;  %v153_v16 = vld [vmem:[#allocation6 + $0x38] sm:$0xff]  ;;  %v154_v18 = vld [vmem:[#allocation6 + $0x40] sm:$0xff]  ;;  %v155_v19 = vld [vmem:[#allocation6 + $0x48] sm:$0xff]  ;;  %vm242_vm2 = vcmp.lt.s32.totalorder %v241_v36, 4 }
  0x3a   :  { %345 = vmatprep.subr.bf16.mxu1 %v449_v0  ;;  %v352_v17 = vpack.c.bf16 %v153_v16, %v152_v15  ;;  %v355_v20 = vpack.c.bf16 %v155_v19, %v154_v18  ;;  %v156_v21 = vld [vmem:[#allocation6 + $0x50] sm:$0xff]  ;;  %v157_v22 = vld [vmem:[#allocation6 + $0x58] sm:$0xff]  ;;  %v158_v24 = vld [vmem:[#allocation6 + $0x60] sm:$0xff] }
  0x3b   :  { %v358_v23 = vpack.c.bf16 %v157_v22, %v156_v21  ;;  %v159_v25 = vld [vmem:[#allocation6 + $0x68] sm:$0xff]  ;;  %v160_v27 = vld [vmem:[#allocation6 + $0x70] sm:$0xff]  ;;  %v161_v28 = vld [vmem:[#allocation6 + $0x78] sm:$0xff] }
  0x3c   :  { %302 = vmatmul.mubr.msk.f32.vlgmr.msra.gmra.mrb[0].mxu0 %vm71_vm1, %v61_v10  ;;  %v361_v26 = vpack.c.bf16 %v159_v25, %v158_v24  ;;  %v364_v29 = vpack.c.bf16 %v161_v28, %v160_v27  ;;  %v274_v30 = vld [vmem:[%s543_s2] ss:$0 sm:$0xff] }
  0x3d   :  { %347 = vmatpush3.bf16.msra.mxu1 %v346_v11  ;;  %v276_v37 = vld [vmem:[%s545_s4] ss:$0 sm:$0xff] }
  0x3e   :  { %348 = vmatprep.subr.bf16.mxu1 %v449_v0 }
  0x41   :  { %350 = vmatpush3.bf16.msra.mxu1 %v349_v14 }
  0x42   :  { %351 = vmatprep.subr.bf16.mxu1 %v449_v0 }
  0x45   :  { %353 = vmatpush3.bf16.msra.mxu1 %v352_v17 }
  0x46   :  { %354 = vmatprep.subr.bf16.mxu1 %v449_v0 }
  0x49   :  { %356 = vmatpush3.bf16.msra.mxu1 %v355_v20 }
  0x4a   :  { %357 = vmatprep.subr.bf16.mxu1 %v449_v0 }
  0x4d   :  { %359 = vmatpush3.bf16.msra.mxu1 %v358_v23 }
  0x4e   :  { %360 = vmatprep.subr.bf16.mxu1 %v449_v0 }
  0x51   :  { %362 = vmatpush3.bf16.msra.mxu1 %v361_v26 }
  0x52   :  { %363 = vmatprep.subr.bf16.mxu1 %v449_v0 }
  0x55   :  { %365 = vmatpush3.bf16.msra.mxu1 %v364_v29 }
 0x10f   :  { %v141_v31 = vpop.f32.mrb[0].mxu0 }
 0x110   :  { %v142_v32 = vadd.f32 %v274_v30, %v141_v31  ;;  %v303_v33 = vpop.f32.mrb[1].mxu0 }
 0x112   :  { %v145_v34 = vmax.f32 %v142_v32, 0.0 }
 0x114   :  { %337 = vmatmul.mubr.f32.vlgmr.msra.gmra.mrb[0].mxu1 %v145_v34 }
 0x1e7   :  { %v235_v38 = vpop.f32.mrb[0].mxu1 }
 0x1e8   :  { %v236_v39 = vadd.f32 %v276_v37, %v235_v38  ;;  %v338_v40 = vpop.f32.mrb[1].mxu1 }
 0x1ea   :  { %239 = vst [vmem:[%s546_s5] sm:$0xff] %v236_v39  ;;  %v243_v41 = vsel %vm242_vm2, %v236_v39, -inf }
 0x1eb   :  { %244 = vmax.xlane.f32.xlu0 %v243_v41 }
 0x278   :  { %v245_v42 = vpop.xlane.xlu0 %244 }
 0x279   :  { %vm246_vm3 = vcmp.eq.f32.partialorder %v243_v41, %v245_v42 }
 0x27a   :  { %v247_v43 = vsel %vm246_vm3, %v241_v36, 128 }
 0x27b   :  { %v249_v44 = vshra.s32 %v247_v43, 16  ;;  %v248_v46 = vand.u32 65535, %v247_v43 }
 0x27d   :  { %v251_v45 = vcvt.s32.f32 %v249_v44  ;;  %v250_v48 = vcvt.s32.f32 %v248_v46 }
 0x27f   :  { %252 = vmin.xlane.f32.xlu0 %v251_v45 }
 0x30c   :  { %v253_v47 = vpop.xlane.xlu0 %252 }
 0x30d   :  { %vm254_vm4 = vcmp.eq.f32.partialorder %v251_v45, %v253_v47  ;;  %v259_v50 = vcvt.f32.s32 %v253_v47 }
 0x30e   :  { %v255_v49 = vsel %vm254_vm4, %v250_v48, inf }
 0x30f   :  { %256 = vmin.xlane.f32.xlu1 %v255_v49  ;;  %v260_v52 = vshll.u32 %v259_v50, 16 }
 0x39c   :  { %v257_v51 = vpop.xlane.xlu1 %256 }
 0x39d   :  { %v258_v53 = vcvt.f32.s32 %v257_v51 }
 0x39f   :  { %v261_v54 = vadd.s32 %v260_v52, %v258_v53 }
 0x3a1   :  { %263 = vst.msk [vmem:[%s547_s6] sm:$0xff] %vm262_vm5, %v261_v54 }
 0x3a2   :  { %272 = vsyncpa [#allocation3], 1 }
 0x3a3   :  { %273 = vsyncpa [#allocation5], 1 }

</bundles_post_ra>
